<compile_context>
chip_gen: v6e
topology: v6e:2x2x1
jax: 0.10.0
libtpu: 0.0.40
codegen_flags: <defaults>
</compile_context>

<pallas_src>
import functools

import jax
import jax.numpy as jnp
from jax.experimental import pallas as pl
from jax.experimental.pallas import tpu as pltpu


# ----------------------------------------------------------------------------
# Backbone kernel: conv1..conv5 (+folded BN, ReLU) and per-sample max-pool.
# One grid step = TB batch elements = TB*N rows.
# ----------------------------------------------------------------------------
def backbone_kernel(x_ref,
                    w1, t1, w2, t2, w3, t3, w4, t4, w5, t5,
                    pooled_ref):
    rows = x_ref.shape[0]
    tb = pooled_ref.shape[0]
    n_points = rows // tb

    x = x_ref[...].astype(jnp.bfloat16)               # (rows, 3) bf16

    def conv_bn_relu(h, w_r, t_r, out_bf16=True):
        # BN scale already folded into w_r columns (in f32, in the wrapper).
        y = jnp.dot(h, w_r[...], preferred_element_type=jnp.float32)
        y = jnp.maximum(y + t_r[...], 0.0)
        return y.astype(jnp.bfloat16) if out_bf16 else y

    h = conv_bn_relu(x, w1, t1)                       # (rows, 64)
    h = conv_bn_relu(h, w2, t2)                       # (rows, 64)
    h = conv_bn_relu(h, w3, t3)                       # (rows, 64)
    h = conv_bn_relu(h, w4, t4)                       # (rows, 128)
    h = conv_bn_relu(h, w5, t5, out_bf16=False)       # (rows, 128) f32

    # F.adaptive_max_pool1d(x, 1).squeeze(): per-sample max over the points.
    pooled_ref[...] = jnp.max(h.reshape(tb, n_points, h.shape[-1]), axis=1)


# ----------------------------------------------------------------------------
# Head kernel: linear1 (+folded BN6, ReLU), dropout (eval = identity), linear2.
# Runs once at full batch (single grid step).
# ----------------------------------------------------------------------------
def head_kernel(pooled_ref, wl1, t6, wl2, bl2, out_ref):
    g = jnp.dot(pooled_ref[...].astype(jnp.bfloat16), wl1[...],
                preferred_element_type=jnp.float32)
    g = jnp.maximum(g + t6[...], 0.0)                 # (B, 512) f32
    # TODO(synk): nn.Dropout is identity in eval mode; train-mode RNG mask
    # (pltpu.prng_seed / prng_random_bits) not implemented.
    out_ref[...] = jnp.dot(g, wl2[...], preferred_element_type=jnp.float32) + bl2[...]


# ----------------------------------------------------------------------------
# Batch-tile selection
# ----------------------------------------------------------------------------
def _pick_batch_tile(B, N, target_rows=4096):
    """Largest legal batch tile with TB*N <= target_rows.

    Legality: B % TB == 0 and (TB % 8 == 0 or TB == B), so the (TB*N, 3) input
    block and the (TB, 128) output block respect the (8, 128) constraint.
    Among fitting tiles, prefer ones that give >= 2 grid steps (keeps both
    v7x TensorCores busy under dimension_semantics=('parallel',)).
    """
    legal = [t for t in range(1, B + 1)
             if B % t == 0 and (t % 8 == 0 or t == B)]
    fitting = [t for t in legal if t * N <= target_rows]
    if fitting:
        multi = [t for t in fitting if B // t >= 2]
        return max(multi) if multi else max(fitting)
    return min(legal)        # huge N: smallest legal tile


# ----------------------------------------------------------------------------
# Wrapper
# ----------------------------------------------------------------------------
def displacement_forward(x_bnc, params, batch_tile=None):
    """x_bnc: (B, N, 3) float32 (channels-last).  params: dict of f32 weights."""
    B, N, c_in = x_bnc.shape
    assert c_in == 3
    c_out = params["wl2"].shape[1]

    TB = batch_tile if batch_tile is not None else _pick_batch_tile(B, N)
    assert B % TB == 0 and (TB % 8 == 0 or TB == B), (
        f"batch tile {TB} violates the (8,128) block constraint for B={B}")

    # Fold BN scale into weight columns in f32, THEN cast to bf16 (single
    # rounding step).  Shifts stay f32 and are applied on the f32 accumulator.
    conv_ws = [(params[f"w{i}"] * params[f"s{i}"]).astype(jnp.bfloat16)
               for i in range(1, 6)]
    conv_ts = [params[f"t{i}"] for i in range(1, 6)]
    wl1f = (params["wl1"] * params["s6"]).astype(jnp.bfloat16)

    # Pre-flatten to rows; keep f32 (cast to bf16 inside the kernel).
    x_flat = x_bnc.reshape(B * N, c_in)

    weight_args, weight_specs = [], []
    for w, t in zip(conv_ws, conv_ts):
        for arr in (w, t):
            # Full-array resident blocks, constant index map (no per-step refetch).
            weight_specs.append(
                pl.BlockSpec(arr.shape, lambda b, _n=arr.ndim: (0,) * _n))
            weight_args.append(arr)

    flops_backbone = 2 * B * N * (3 * 64 + 64 * 64 + 64 * 64 + 64 * 128 + 128 * 128)
    bytes_backbone = (x_flat.size * x_flat.dtype.itemsize
                      + sum(a.size * a.dtype.itemsize for a in weight_args)
                      + B * 128 * 4)

    pooled = pl.pallas_call(
        backbone_kernel,
        out_shape=jax.ShapeDtypeStruct((B, 128), jnp.float32),
        grid_spec=pltpu.PrefetchScalarGridSpec(
            num_scalar_prefetch=0,
            grid=(B // TB,),
            in_specs=[pl.BlockSpec((TB * N, c_in), lambda b: (b, 0))] + weight_specs,
            out_specs=pl.BlockSpec((TB, 128), lambda b: (b, 0)),
        ),
        compiler_params=pltpu.CompilerParams(
            # Batch steps are fully independent -> shard across v7x TensorCores.
            dimension_semantics=("parallel",),
            # Explicit budget that fits v7x's 64 MiB physical VMEM per TC while
            # allowing large row tiles on v5e/v6e.
            vmem_limit_bytes=48 * 1024 * 1024,
        ),
        cost_estimate=pl.CostEstimate(flops=flops_backbone,
                                      transcendentals=0,
                                      bytes_accessed=bytes_backbone),
    )(x_flat, *weight_args)

    # Head: one tiny step at full batch (M = B), lane-dense pooled input.
    head_args = [pooled, wl1f, params["t6"], params["wl2"], params["bl2"]]
    head_specs = [pl.BlockSpec(a.shape, lambda i, _n=a.ndim: (0,) * _n)
                  for a in head_args]
    flops_head = 2 * B * (128 * 512 + 512 * c_out)
    bytes_head = (sum(a.size * a.dtype.itemsize for a in head_args)
                  + B * c_out * 4)

    out = pl.pallas_call(
        head_kernel,
        out_shape=jax.ShapeDtypeStruct((B, c_out), jnp.float32),
        grid_spec=pltpu.PrefetchScalarGridSpec(
            num_scalar_prefetch=0,
            grid=(1,),
            in_specs=head_specs,
            out_specs=pl.BlockSpec((B, c_out), lambda i: (0, 0)),
        ),
        compiler_params=pltpu.CompilerParams(
            dimension_semantics=("arbitrary",)),
        cost_estimate=pl.CostEstimate(flops=flops_head,
                                      transcendentals=0,
                                      bytes_accessed=bytes_head),
    )(*head_args)
    return out


# ----------------------------------------------------------------------------
# Deterministic parameter construction (synthetic, eval-mode BN folding)
# ----------------------------------------------------------------------------
def make_params(key, output_channels=3):
    eps = 1e-5

    def fold_bn(kg, kb, km, kv, c):
        gamma = jax.random.uniform(kg, (1, c), jnp.float32, 0.5, 1.5)
        beta = jax.random.uniform(kb, (1, c), jnp.float32, -0.2, 0.2)
        mean = jax.random.uniform(km, (1, c), jnp.float32, -0.1, 0.1)
        var = jax.random.uniform(kv, (1, c), jnp.float32, 0.5, 1.5)
        scale = gamma / jnp.sqrt(var + eps)
        shift = beta - mean * scale
        return scale, shift

    keys = jax.random.split(key, 32)
    ki = iter(range(32))

    def w(shape):
        fan_in = shape[0]
        return jax.random.normal(keys[next(ki)], shape, jnp.float32) / jnp.sqrt(fan_in)

    p = {}
    dims = [(3, 64), (64, 64), (64, 64), (64, 128), (128, 128)]
    for i, (ci, co) in enumerate(dims, start=1):
        p[f"w{i}"] = w((ci, co))
        p[f"s{i}"], p[f"t{i}"] = fold_bn(keys[next(ki)], keys[next(ki)],
                                         keys[next(ki)], keys[next(ki)], co)
    p["wl1"] = w((128, 512))
    p["s6"], p["t6"] = fold_bn(keys[next(ki)], keys[next(ki)],
                               keys[next(ki)], keys[next(ki)], 512)
    p["wl2"] = w((512, output_channels))
    p["bl2"] = jax.random.uniform(keys[next(ki)], (1, output_channels),
                                  jnp.float32, -0.1, 0.1)
    return p


# ----------------------------------------------------------------------------
# Pure-JAX reference (mirrors the kernel's folded-weight bf16/f32 math).
# Note: bf16 inputs / inter-layer activations differ from a true f32 PyTorch
# model at roughly the 1e-2 level; tolerances below reflect that.
# ----------------------------------------------------------------------------
def reference_forward(x_bnc, p):
    bf16 = jnp.bfloat16

    def cbr(h, w, s, t):
        wf = (w * s).astype(bf16)            # same f32 fold -> bf16 as the kernel
        y = jnp.einsum("bnc,cd->bnd", h.astype(bf16), wf,
                       preferred_element_type=jnp.float32)
        return jnp.maximum(y + t, 0.0)

    h = cbr(x_bnc, p["w1"], p["s1"], p["t1"])
    h = cbr(h, p["w2"], p["s2"], p["t2"])
    h = cbr(h, p["w3"], p["s3"], p["t3"])
    h = cbr(h, p["w4"], p["s4"], p["t4"])
    h = cbr(h, p["w5"], p["s5"], p["t5"])
    pooled = jnp.max(h, axis=1)                                  # (B, 128) f32
    g = jnp.dot(pooled.astype(bf16), (p["wl1"] * p["s6"]).astype(bf16),
                preferred_element_type=jnp.float32)
    g = jnp.maximum(g + p["t6"], 0.0)
    return jnp.dot(g, p["wl2"], preferred_element_type=jnp.float32) + p["bl2"]


if __name__ == "__main__":
    B, N = 2, 64
    output_channels = 3

    key = jax.random.PRNGKey(0)
    k_x, k_p = jax.random.split(key)

    # PyTorch input would be (B, 3, N); kernel layout is (B, N, 3).
    x_ncl = jax.random.normal(k_x, (B, 3, N), jnp.float32)
    x_bnc = jnp.transpose(x_ncl, (0, 2, 1))

    params = make_params(k_p, output_channels)

    out = displacement_forward(x_bnc, params)
    out = jax.block_until_ready(out)

    ref = reference_forward(x_bnc, params)
    assert out.shape == (B, output_channels)
    assert jnp.allclose(out, ref, atol=2e-2, rtol=2e-2), (out, ref)

    print("KERNEL_OK")
</pallas_src>

<mosaic_0001>
module attributes {stable_mosaic.version = 11 : i64} {
  func.func @backbone_kernel(%arg0: i32, %arg1: memref<128x3xf32, #tpu.memory_space<vmem>>, %arg2: memref<3x64xbf16, #tpu.memory_space<vmem>>, %arg3: memref<1x64xf32, #tpu.memory_space<vmem>>, %arg4: memref<64x64xbf16, #tpu.memory_space<vmem>>, %arg5: memref<1x64xf32, #tpu.memory_space<vmem>>, %arg6: memref<64x64xbf16, #tpu.memory_space<vmem>>, %arg7: memref<1x64xf32, #tpu.memory_space<vmem>>, %arg8: memref<64x128xbf16, #tpu.memory_space<vmem>>, %arg9: memref<1x128xf32, #tpu.memory_space<vmem>>, %arg10: memref<128x128xbf16, #tpu.memory_space<vmem>>, %arg11: memref<1x128xf32, #tpu.memory_space<vmem>>, %arg12: memref<2x128xf32, #tpu.memory_space<vmem>>) attributes {dimension_semantics = [#tpu.dimension_semantics<parallel>], iteration_bounds = array<i64: 1>, scalar_prefetch = 0 : i64, scratch_operands = 0 : i64, tpu.core_type = #tpu.core_type<tc>, window_params = [{transform_indices = @transform_0, window_bounds = array<i64: 128, 3>}, {pipeline_mode = #tpu.pipeline_mode<synchronous>, transform_indices = @transform_1, window_bounds = array<i64: 3, 64>}, {pipeline_mode = #tpu.pipeline_mode<synchronous>, transform_indices = @transform_2, window_bounds = array<i64: 1, 64>}, {pipeline_mode = #tpu.pipeline_mode<synchronous>, transform_indices = @transform_3, window_bounds = array<i64: 64, 64>}, {pipeline_mode = #tpu.pipeline_mode<synchronous>, transform_indices = @transform_4, window_bounds = array<i64: 1, 64>}, {pipeline_mode = #tpu.pipeline_mode<synchronous>, transform_indices = @transform_5, window_bounds = array<i64: 64, 64>}, {pipeline_mode = #tpu.pipeline_mode<synchronous>, transform_indices = @transform_6, window_bounds = array<i64: 1, 64>}, {pipeline_mode = #tpu.pipeline_mode<synchronous>, transform_indices = @transform_7, window_bounds = array<i64: 64, 128>}, {pipeline_mode = #tpu.pipeline_mode<synchronous>, transform_indices = @transform_8, window_bounds = array<i64: 1, 128>}, {pipeline_mode = #tpu.pipeline_mode<synchronous>, transform_indices = @transform_9, window_bounds = array<i64: 128, 128>}, {pipeline_mode = #tpu.pipeline_mode<synchronous>, transform_indices = @transform_10, window_bounds = array<i64: 1, 128>}, {transform_indices = @transform_11, window_bounds = array<i64: 2, 128>}]} {
    %c0 = arith.constant 0 : index
    %c0_0 = arith.constant 0 : index
    %0 = vector.load %arg1[%c0, %c0_0] : memref<128x3xf32, #tpu.memory_space<vmem>>, vector<128x3xf32>
    %1 = arith.truncf %0 : vector<128x3xf32> to vector<128x3xbf16>
    %c0_1 = arith.constant 0 : index
    %c0_2 = arith.constant 0 : index
    %2 = vector.load %arg2[%c0_1, %c0_2] : memref<3x64xbf16, #tpu.memory_space<vmem>>, vector<3x64xbf16>
    %cst = arith.constant dense<0.000000e+00> : vector<128x64xf32>
    %3 = tpu.matmul %1, %2, %cst {dimension_numbers = #tpu.dot_dimension_numbers<[1], [0], [0], [1], [0, 0, 1, 1], [], []>} : vector<128x3xbf16>, vector<3x64xbf16>, vector<128x64xf32> -> vector<128x64xf32>
    %c0_3 = arith.constant 0 : index
    %c0_4 = arith.constant 0 : index
    %4 = vector.load %arg3[%c0_3, %c0_4] : memref<1x64xf32, #tpu.memory_space<vmem>>, vector<1x64xf32>
    %5 = vector.broadcast %4 : vector<1x64xf32> to vector<128x64xf32>
    %6 = arith.addf %3, %5 : vector<128x64xf32>
    %cst_5 = arith.constant 0.000000e+00 : f32
    %7 = vector.broadcast %cst_5 : f32 to vector<128x64xf32>
    %8 = arith.maximumf %6, %7 : vector<128x64xf32>
    %9 = arith.truncf %8 : vector<128x64xf32> to vector<128x64xbf16>
    %c0_6 = arith.constant 0 : index
    %c0_7 = arith.constant 0 : index
    %10 = vector.load %arg4[%c0_6, %c0_7] : memref<64x64xbf16, #tpu.memory_space<vmem>>, vector<64x64xbf16>
    %cst_8 = arith.constant dense<0.000000e+00> : vector<128x64xf32>
    %11 = tpu.matmul %9, %10, %cst_8 {dimension_numbers = #tpu.dot_dimension_numbers<[1], [0], [0], [1], [0, 0, 1, 1], [], []>} : vector<128x64xbf16>, vector<64x64xbf16>, vector<128x64xf32> -> vector<128x64xf32>
    %c0_9 = arith.constant 0 : index
    %c0_10 = arith.constant 0 : index
    %12 = vector.load %arg5[%c0_9, %c0_10] : memref<1x64xf32, #tpu.memory_space<vmem>>, vector<1x64xf32>
    %13 = vector.broadcast %12 : vector<1x64xf32> to vector<128x64xf32>
    %14 = arith.addf %11, %13 : vector<128x64xf32>
    %cst_11 = arith.constant 0.000000e+00 : f32
    %15 = vector.broadcast %cst_11 : f32 to vector<128x64xf32>
    %16 = arith.maximumf %14, %15 : vector<128x64xf32>
    %17 = arith.truncf %16 : vector<128x64xf32> to vector<128x64xbf16>
    %c0_12 = arith.constant 0 : index
    %c0_13 = arith.constant 0 : index
    %18 = vector.load %arg6[%c0_12, %c0_13] : memref<64x64xbf16, #tpu.memory_space<vmem>>, vector<64x64xbf16>
    %cst_14 = arith.constant dense<0.000000e+00> : vector<128x64xf32>
    %19 = tpu.matmul %17, %18, %cst_14 {dimension_numbers = #tpu.dot_dimension_numbers<[1], [0], [0], [1], [0, 0, 1, 1], [], []>} : vector<128x64xbf16>, vector<64x64xbf16>, vector<128x64xf32> -> vector<128x64xf32>
    %c0_15 = arith.constant 0 : index
    %c0_16 = arith.constant 0 : index
    %20 = vector.load %arg7[%c0_15, %c0_16] : memref<1x64xf32, #tpu.memory_space<vmem>>, vector<1x64xf32>
    %21 = vector.broadcast %20 : vector<1x64xf32> to vector<128x64xf32>
    %22 = arith.addf %19, %21 : vector<128x64xf32>
    %cst_17 = arith.constant 0.000000e+00 : f32
    %23 = vector.broadcast %cst_17 : f32 to vector<128x64xf32>
    %24 = arith.maximumf %22, %23 : vector<128x64xf32>
    %25 = arith.truncf %24 : vector<128x64xf32> to vector<128x64xbf16>
    %c0_18 = arith.constant 0 : index
    %c0_19 = arith.constant 0 : index
    %26 = vector.load %arg8[%c0_18, %c0_19] : memref<64x128xbf16, #tpu.memory_space<vmem>>, vector<64x128xbf16>
    %cst_20 = arith.constant dense<0.000000e+00> : vector<128x128xf32>
    %27 = tpu.matmul %25, %26, %cst_20 {dimension_numbers = #tpu.dot_dimension_numbers<[1], [0], [0], [1], [0, 0, 1, 1], [], []>} : vector<128x64xbf16>, vector<64x128xbf16>, vector<128x128xf32> -> vector<128x128xf32>
    %c0_21 = arith.constant 0 : index
    %c0_22 = arith.constant 0 : index
    %28 = vector.load %arg9[%c0_21, %c0_22] : memref<1x128xf32, #tpu.memory_space<vmem>>, vector<1x128xf32>
    %29 = vector.broadcast %28 : vector<1x128xf32> to vector<128x128xf32>
    %30 = arith.addf %27, %29 : vector<128x128xf32>
    %cst_23 = arith.constant 0.000000e+00 : f32
    %31 = vector.broadcast %cst_23 : f32 to vector<128x128xf32>
    %32 = arith.maximumf %30, %31 : vector<128x128xf32>
    %33 = arith.truncf %32 : vector<128x128xf32> to vector<128x128xbf16>
    %c0_24 = arith.constant 0 : index
    %c0_25 = arith.constant 0 : index
    %34 = vector.load %arg10[%c0_24, %c0_25] : memref<128x128xbf16, #tpu.memory_space<vmem>>, vector<128x128xbf16>
    %cst_26 = arith.constant dense<0.000000e+00> : vector<128x128xf32>
    %35 = tpu.matmul %33, %34, %cst_26 {dimension_numbers = #tpu.dot_dimension_numbers<[1], [0], [0], [1], [0, 0, 1, 1], [], []>} : vector<128x128xbf16>, vector<128x128xbf16>, vector<128x128xf32> -> vector<128x128xf32>
    %c0_27 = arith.constant 0 : index
    %c0_28 = arith.constant 0 : index
    %36 = vector.load %arg11[%c0_27, %c0_28] : memref<1x128xf32, #tpu.memory_space<vmem>>, vector<1x128xf32>
    %37 = vector.broadcast %36 : vector<1x128xf32> to vector<128x128xf32>
    %38 = arith.addf %35, %37 : vector<128x128xf32>
    %cst_29 = arith.constant 0.000000e+00 : f32
    %39 = vector.broadcast %cst_29 : f32 to vector<128x128xf32>
    %40 = arith.maximumf %38, %39 : vector<128x128xf32>
    %41 = vector.shape_cast %40 : vector<128x128xf32> to vector<2x64x128xf32>
    %cst_30 = arith.constant dense<0xFF800000> : vector<2x128xf32>
    %42 = vector.multi_reduction <maximumf>, %41, %cst_30 [1] : vector<2x64x128xf32> to vector<2x128xf32>
    %c0_31 = arith.constant 0 : index
    %c0_32 = arith.constant 0 : index
    %43 = vector.load %arg12[%c0_31, %c0_32] : memref<2x128xf32, #tpu.memory_space<vmem>>, vector<2x128xf32>
    tpu.vector_store %arg12[%c0_31, %c0_32], %42 {strides = array<i32>} : memref<2x128xf32, #tpu.memory_space<vmem>>, vector<2x128xf32>,
    return
  }
  func.func @transform_0(%arg0: i32) -> (i32, i32) {
    %c0_i32 = arith.constant 0 : i32
    %c0_i32_0 = arith.constant 0 : i32
    return %arg0, %c0_i32 : i32, i32
  }
  func.func @transform_1(%arg0: i32) -> (i32, i32) {
    %c0_i32 = arith.constant 0 : i32
    %c0_i32_0 = arith.constant 0 : i32
    %c0_i32_1 = arith.constant 0 : i32
    return %c0_i32, %c0_i32_0 : i32, i32
  }
  func.func @transform_2(%arg0: i32) -> (i32, i32) {
    %c0_i32 = arith.constant 0 : i32
    %c0_i32_0 = arith.constant 0 : i32
    %c0_i32_1 = arith.constant 0 : i32
    return %c0_i32, %c0_i32_0 : i32, i32
  }
  func.func @transform_3(%arg0: i32) -> (i32, i32) {
    %c0_i32 = arith.constant 0 : i32
    %c0_i32_0 = arith.constant 0 : i32
    %c0_i32_1 = arith.constant 0 : i32
    return %c0_i32, %c0_i32_0 : i32, i32
  }
  func.func @transform_4(%arg0: i32) -> (i32, i32) {
    %c0_i32 = arith.constant 0 : i32
    %c0_i32_0 = arith.constant 0 : i32
    %c0_i32_1 = arith.constant 0 : i32
    return %c0_i32, %c0_i32_0 : i32, i32
  }
  func.func @transform_5(%arg0: i32) -> (i32, i32) {
    %c0_i32 = arith.constant 0 : i32
    %c0_i32_0 = arith.constant 0 : i32
    %c0_i32_1 = arith.constant 0 : i32
    return %c0_i32, %c0_i32_0 : i32, i32
  }
  func.func @transform_6(%arg0: i32) -> (i32, i32) {
    %c0_i32 = arith.constant 0 : i32
    %c0_i32_0 = arith.constant 0 : i32
    %c0_i32_1 = arith.constant 0 : i32
    return %c0_i32, %c0_i32_0 : i32, i32
  }
  func.func @transform_7(%arg0: i32) -> (i32, i32) {
    %c0_i32 = arith.constant 0 : i32
    %c0_i32_0 = arith.constant 0 : i32
    %c0_i32_1 = arith.constant 0 : i32
    return %c0_i32, %c0_i32_0 : i32, i32
  }
  func.func @transform_8(%arg0: i32) -> (i32, i32) {
    %c0_i32 = arith.constant 0 : i32
    %c0_i32_0 = arith.constant 0 : i32
    %c0_i32_1 = arith.constant 0 : i32
    return %c0_i32, %c0_i32_0 : i32, i32
  }
  func.func @transform_9(%arg0: i32) -> (i32, i32) {
    %c0_i32 = arith.constant 0 : i32
    %c0_i32_0 = arith.constant 0 : i32
    %c0_i32_1 = arith.constant 0 : i32
    return %c0_i32, %c0_i32_0 : i32, i32
  }
  func.func @transform_10(%arg0: i32) -> (i32, i32) {
    %c0_i32 = arith.constant 0 : i32
    %c0_i32_0 = arith.constant 0 : i32
    %c0_i32_1 = arith.constant 0 : i32
    return %c0_i32, %c0_i32_0 : i32, i32
  }
  func.func @transform_11(%arg0: i32) -> (i32, i32) {
    %c0_i32 = arith.constant 0 : i32
    %c0_i32_0 = arith.constant 0 : i32
    return %arg0, %c0_i32 : i32, i32
  }
}

</mosaic_0001>

<bundles_post_ra>
// kernel: tpu_custom_call.1
= control target key start
LH: loop header
LB: loop body
LE: loop exit
PB: predicated region body
PF: predicated region fallthrough
CT: control target
= control target key end

     0   :  { %16 = vsyncpa [#allocation3], 0  ;;  %s1551_s0 = inlined_call_operand.vmem [shape: f32[128,3], index: 0, kind: input, shape index: {}]   ;;  %s1552_s1 = inlined_call_operand.vmem [shape: bf16[3,64], index: 1, kind: input, shape index: {}]   ;;  %s1553_s2 = inlined_call_operand.vmem [shape: f32[1,64], index: 2, kind: input, shape index: {}]   ;;  %s1554_s3 = inlined_call_operand.vmem [shape: bf16[64,64], index: 3, kind: input, shape index: {}]   ;;  %s1555_s4 = inlined_call_operand.vmem [shape: f32[1,64], index: 4, kind: input, shape index: {}]   ;;  %s1556_s5 = inlined_call_operand.vmem [shape: bf16[64,64], index: 5, kind: input, shape index: {}]   ;;  %s1557_s6 = inlined_call_operand.vmem [shape: f32[1,64], index: 6, kind: input, shape index: {}]   ;;  %s1558_s7 = inlined_call_operand.hbm [shape: bf16[64,128], index: 7, kind: input, shape index: {}]   ;;  %s1559_s8 = inlined_call_operand.vmem [shape: f32[1,128], index: 8, kind: input, shape index: {}]   ;;  %s1560_s9 = inlined_call_operand.vmem [shape: bf16[128,128], index: 9, kind: input, shape index: {}]   ;;  %s1561_s10 = inlined_call_operand.vmem [shape: f32[1,128], index: 10, kind: input, shape index: {}]   ;;  %s1562_s11 = inlined_call_operand.hbm [shape: f32[2,128], index: 11, kind: output, shape index: {}]  }
   0x1   :  { %17 = vsyncpa [#allocation4], 0  ;;  %s1334_s17 = smov [#allocation2]  }
   0x2   :  { %s37_s18 = sshll.u32 %s1334_s17, 4  ;;  %s38_s18 = int_to_ptr.vmem [resolvable:$true] %s37_s18 }
   0x3   :  { %s1298_s19 = scalar_lea.vmem %s38_s18, 512  ;;  %p1303_p1 = scmp.lt.s32.totalorder %s38_s18, %s38_s18 }
   0x4   :  { %p1299_p0 = scmp.ne.s32.totalorder %s38_s18, %s1298_s19  ;;  %p1304_p2 = scmp.lt.s32.totalorder %s1298_s19, %s1298_s19 }
   0x6   :  { %p1305_p3 = por %p1304_p2, %p1303_p1 }
   0x8   :  { %p1306_p4 = pnand %p1305_p3, %p1299_p0 }
   0xa   :  { %1309 = shalt.err (!%p1306_p4)
}
   0xb   :  { %s1335_s20 = smov 64   ;;  %s1336_s21 = smov 4  }
   0xc   :  { %43 = dma.hbm_to_vmem [thread:$0]  %s1558_s7, 512, %s38_s18, [#allocation3], %s1335_s20, %s1335_s20, %s1336_s21  }
   0xd   :  { %1330 = dma.done.wait [#allocation3], 512  }
   0xe   :  { %1331 = vsyncadd [#allocation3], 4294966784  ;;  %vm111_vm0 = vcmask 1040384   ;;  %vm112_vm1 = vcmask 1041408   ;;  %v1337_v0 = vmov 65535   ;;  %v54_v4 = vld [vmem:[%s1551_s0] sm:$0xff] }
   0xf   :  { %v113_v1 = vsel %vm111_vm0, 4294967295, %v1337_v0  ;;  %v78_v3 = vld [vmem:[%s1552_s1] sm:$0x3]  ;;  %v55_v5 = vld [vmem:[%s1551_s0 + $0x8] sm:$0xff]  ;;  %vm86_vm2 = vcmask 23552   ;;  %v56_v8 = vld [vmem:[%s1551_s0 + $0x10] sm:$0xff] }
  0x10   :  { %v114_v2 = vsel %vm112_vm1, %v113_v1, 0  ;;  %v70_v7 = vpack.c.bf16 %v55_v5, %v54_v4  ;;  %v57_v9 = vld [vmem:[%s1551_s0 + $0x18] sm:$0xff]  ;;  %v58_v10 = vld [vmem:[%s1551_s0 + $0x20] sm:$0xff]  ;;  %v59_v11 = vld [vmem:[%s1551_s0 + $0x28] sm:$0xff]  ;;  %vm278_vm3 = vcmask 523264   ;;  %vm1004_vm4 = vcmask 1041409  }
  0x11   :  { %v116_v6 = vand.u32 %v114_v2, %v78_v3  ;;  %v71_v12 = vpack.c.bf16 %v57_v9, %v56_v8  ;;  %v62_v13 = vld [vmem:[%s1551_s0 + $0x40] sm:$0xff]  ;;  %v63_v14 = vld [vmem:[%s1551_s0 + $0x48] sm:$0xff]  ;;  %v64_v15 = vld [vmem:[%s1551_s0 + $0x50] sm:$0xff]  ;;  %v72_v16 = vpack.c.bf16 %v59_v11, %v58_v10 }
  0x12   :  { %1143 = vmatprep.mubr.msk.bf16.mxu0 %vm86_vm2, %v70_v7  ;;  %v74_v17 = vpack.c.bf16 %v63_v14, %v62_v13  ;;  %v65_v18 = vld [vmem:[%s1551_s0 + $0x58] sm:$0xff]  ;;  %v66_v19 = vld [vmem:[%s1551_s0 + $0x60] sm:$0xff]  ;;  %v67_v20 = vld [vmem:[%s1551_s0 + $0x68] sm:$0xff] }
  0x13   :  { %1141 = vmatprep.subr.bf16.mxu0 %v116_v6  ;;  %1263 = vmatprep.subr.bf16.mxu1 %v116_v6  ;;  %v75_v21 = vpack.c.bf16 %v65_v18, %v64_v15  ;;  %v76_v22 = vpack.c.bf16 %v67_v20, %v66_v19  ;;  %v60_v23 = vld [vmem:[%s1551_s0 + $0x30] sm:$0xff]  ;;  %v61_v24 = vld [vmem:[%s1551_s0 + $0x38] sm:$0xff]  ;;  %v1272_v31 = vld [vmem:[%s1554_s3 + $0x8] sm:$0xff]  }
  0x14   :  { %1142 = vmatpush3.bf16.msra.mxu0 %v116_v6  ;;  %1264 = vmatpush3.bf16.msra.mxu1 %v116_v6  ;;  %v1270_v25 = vld [vmem:[%s1554_s3 + $0x18] sm:$0xff]   ;;  %v68_v26 = vld [vmem:[%s1551_s0 + $0x70] sm:$0xff]  ;;  %v73_v28 = vpack.c.bf16 %v61_v24, %v60_v23  ;;  %v1273_v32 = vld [vmem:[%s1554_s3] sm:$0xff]  }
  0x15   :  { %1151 = vmatprep.mubr.msk.bf16.mxu1 %vm86_vm2, %v74_v17  ;;  %v69_v27 = vld [vmem:[%s1551_s0 + $0x78] sm:$0xff]  ;;  %1159 = vmatprep.subr.bf16.mxu1 %v1270_v25  ;;  %v1271_v30 = vld [vmem:[%s1554_s3 + $0x10] sm:$0xff]   ;;  %v1023_v37 = vld [vmem:[%s1553_s2] ss:$0 sm:$0xff] }
  0x16   :  { %v77_v29 = vpack.c.bf16 %v69_v27, %v68_v26  ;;  %v1274_v33 = vld [vmem:[%s1556_s5 + $0x18] sm:$0xff]   ;;  %v1275_v27 = vld [vmem:[%s1556_s5 + $0x10] sm:$0xff]  }
  0x17   :  { %1144 = vmatmul.mubr.msk.bf16.vlgmr.msra.gmra.mxu0 %vm86_vm2, %v71_v12  ;;  %1152 = vmatmul.mubr.msk.bf16.vlgmr.msra.gmra.mxu1 %vm86_vm2, %v75_v21 }
  0x18   :  { %1147 = vmatprep.mubr.msk.bf16.mxu0 %vm86_vm2, %v72_v16  ;;  %1155 = vmatprep.mubr.msk.bf16.mxu1 %vm86_vm2, %v76_v22 }
  0x19   :  { %1160 = vmatpush3.bf16.msra.mxu1 %v1270_v25  ;;  %1183 = vmatprep.subr.bf16.mxu0 %v1274_v33 }
  0x1a   :  { %1161 = vmatprep.subr.bf16.mxu1 %v1271_v30  ;;  %1184 = vmatpush3.bf16.msra.mxu0 %v1274_v33 }
  0x1b   :  { %1185 = vmatprep.subr.bf16.mxu0 %v1275_v27 }
  0x1d   :  { %1162 = vmatpush3.bf16.msra.mxu1 %v1271_v30  ;;  %v1278_v30 = vld [vmem:[#allocation2 + $0x18] sm:$0xff]  }
  0x1e   :  { %1163 = vmatprep.subr.bf16.mxu1 %v1272_v31  ;;  %1186 = vmatpush3.bf16.msra.mxu0 %v1275_v27  ;;  %v1282_v27 = vld [vmem:[%s1560_s9 + $0x38] sm:$0xff]  }
  0x1f   :  { %1148 = vmatmul.mubr.msk.bf16.gmra.mxu0 %vm86_vm2, %v73_v28  ;;  %1156 = vmatmul.mubr.msk.bf16.gmra.mxu1 %vm86_vm2, %v77_v29  ;;  %v1276_v28 = vld [vmem:[%s1556_s5 + $0x8] sm:$0xff]   ;;  %v1277_v29 = vld [vmem:[%s1556_s5] sm:$0xff]  }
  0x20   :  { %1187 = vmatprep.subr.bf16.mxu0 %v1276_v28 }
  0x21   :  { %1164 = vmatpush3.bf16.msra.mxu1 %v1272_v31  ;;  %v1279_v31 = vld [vmem:[#allocation2 + $0x10] sm:$0xff]  }
  0x22   :  { %1165 = vmatprep.subr.bf16.mxu1 %v1273_v32  ;;  %1188 = vmatpush3.bf16.msra.mxu0 %v1276_v28  ;;  %v1283_v28 = vld [vmem:[%s1560_s9 + $0x30] sm:$0xff]  }
  0x23   :  { %1189 = vmatprep.subr.bf16.mxu0 %v1277_v29 }
  0x25   :  { %1166 = vmatpush3.bf16.msra.mxu1 %v1273_v32  ;;  %v1280_v32 = vld [vmem:[#allocation2 + $0x8] sm:$0xff]  }
  0x26   :  { %1190 = vmatpush3.bf16.msra.mxu0 %v1277_v29  ;;  %1207 = vmatprep.subr.bf16.mxu1 %v1278_v30  ;;  %v1284_v29 = vld [vmem:[%s1560_s9 + $0x28] sm:$0xff]  }
  0x27   :  { %1231 = vmatprep.subr.bf16.mxu0 %v1282_v27 }
  0xd7   :  { %v1145_v34 = vpop.f32.mrf.mxu0  ;;  %v1153_v35 = vpop.f32.mrf.mxu1 }
  0xd8   :  { %v161_v43 = vadd.f32 %v1145_v34, %v1023_v37  ;;  %v193_v13 = vadd.f32 %v1153_v35, %v1023_v37  ;;  %v1032_v35 = vld [vmem:[%s1555_s4] ss:$0 sm:$0xff] }
  0xd9   :  { %v152_v36 = vpop.f32.mrf.mxu0  ;;  %v184_v38 = vpop.f32.mrf.mxu1 }
  0xda   :  { %v153_v40 = vadd.f32 %v1023_v37, %v152_v36  ;;  %v217_v52 = vmax.f32 %v161_v43, 0.0  ;;  %v185_v55 = vadd.f32 %v1023_v37, %v184_v38  ;;  %v225_v18 = vmax.f32 %v193_v13, 0.0 }
  0xdb   :  { %v1146_v39 = vpop.f32.mrf.mxu0  ;;  %v1154_v42 = vpop.f32.mrf.mxu1 }
  0xdc   :  { %v164_v41 = vadd.f32 %v1146_v39, %v1023_v37  ;;  %v215_v49 = vmax.f32 %v153_v40, 0.0  ;;  %v223_v1 = vmax.f32 %v185_v55, 0.0  ;;  %v196_v15 = vadd.f32 %v1154_v42, %v1023_v37 }
  0xdd   :  { %v155_v44 = vpop.f32.mrf.mxu0  ;;  %v187_v46 = vpop.f32.mrf.mxu1 }
  0xde   :  { %v156_v45 = vadd.f32 %v1023_v37, %v155_v44  ;;  %v218_v47 = vmax.f32 %v164_v41, 0.0  ;;  %v188_v56 = vadd.f32 %v1023_v37, %v187_v46  ;;  %v226_v19 = vmax.f32 %v196_v15, 0.0 }
  0xdf   :  { %v1149_v48 = vpop.f32.mrf.mxu0  ;;  %v1157_v51 = vpop.f32.mrf.mxu1 }
  0xe0   :  { %v216_v50 = vmax.f32 %v156_v45, 0.0  ;;  %v232_v58 = vpack.c.bf16 %v218_v47, %v217_v52  ;;  %v177_v63 = vadd.f32 %v1149_v48, %v1023_v37  ;;  %v224_v3 = vmax.f32 %v188_v56, 0.0 }
  0xe1   :  { %v168_v53 = vpop.f32.mrf.mxu0  ;;  %v200_v57 = vpop.f32.mrf.mxu1  ;;  %v236_v21 = vpack.c.bf16 %v226_v19, %v225_v18  ;;  %v209_v22 = vadd.f32 %v1157_v51, %v1023_v37 }
  0xe2   :  { %v231_v54 = vpack.c.bf16 %v216_v50, %v215_v49  ;;  %v169_v60 = vadd.f32 %v1023_v37, %v168_v53  ;;  %v221_v8 = vmax.f32 %v177_v63, 0.0  ;;  %v235_v10 = vpack.c.bf16 %v224_v3, %v223_v1 }
  0xe3   :  { %v1150_v59 = vpop.f32.mrf.mxu0  ;;  %v1158_v62 = vpop.f32.mrf.mxu1  ;;  %v201_v11 = vadd.f32 %v1023_v37, %v200_v57  ;;  %v229_v24 = vmax.f32 %v209_v22, 0.0 }
  0xe4   :  { %v180_v61 = vadd.f32 %v1150_v59, %v1023_v37  ;;  %1167 = vmatprep.mubr.msk.bf16.mxu1 %vm278_vm3, %v231_v54  ;;  %v219_v6 = vmax.f32 %v169_v60, 0.0  ;;  %v212_v23 = vadd.f32 %v1158_v62, %v1023_v37 }
  0xe5   :  { %v171_v0 = vpop.f32.mrf.mxu0  ;;  %1168 = vmatmul.mubr.msk.bf16.vlgmr.msra.gmra.mxu1 %vm278_vm3, %v232_v58  ;;  %v203_v5 = vpop.f32.mrf.mxu1  ;;  %v227_v16 = vmax.f32 %v201_v11, 0.0 }
  0xe6   :  { %v172_v2 = vadd.f32 %v1023_v37, %v171_v0  ;;  %v222_v4 = vmax.f32 %v180_v61, 0.0  ;;  %v204_v12 = vadd.f32 %v1023_v37, %v203_v5  ;;  %v230_v25 = vmax.f32 %v212_v23, 0.0  ;;  %1208 = vmatpush3.bf16.msra.mxu1 %v1278_v30  ;;  %v1285_v30 = vld [vmem:[%s1560_s9 + $0x20] sm:$0xff]  }
  0xe7   :  { %1209 = vmatprep.subr.bf16.mxu1 %v1279_v31 }
  0xe8   :  { %v220_v7 = vmax.f32 %v172_v2, 0.0  ;;  %v234_v14 = vpack.c.bf16 %v222_v4, %v221_v8  ;;  %v228_v17 = vmax.f32 %v204_v12, 0.0  ;;  %v238_v26 = vpack.c.bf16 %v230_v25, %v229_v24 }
  0xea   :  { %v233_v9 = vpack.c.bf16 %v220_v7, %v219_v6  ;;  %v237_v20 = vpack.c.bf16 %v228_v17, %v227_v16  ;;  %1210 = vmatpush3.bf16.msra.mxu1 %v1279_v31  ;;  %v1286_v31 = vld [vmem:[%s1560_s9 + $0x18] sm:$0xff]  }
  0xeb   :  { %1211 = vmatprep.subr.bf16.mxu1 %v1280_v32 }
  0xec   :  { %1171 = vmatprep.mubr.msk.bf16.mxu1 %vm278_vm3, %v233_v9 }
  0xed   :  { %1172 = vmatmul.mubr.msk.bf16.gmra.mxu1 %vm278_vm3, %v234_v14 }
  0xee   :  { %1175 = vmatprep.mubr.msk.bf16.mxu1 %vm278_vm3, %v235_v10  ;;  %1212 = vmatpush3.bf16.msra.mxu1 %v1280_v32 }
  0xf5   :  { %1176 = vmatmul.mubr.msk.bf16.gmra.mxu1 %vm278_vm3, %v236_v21 }
  0xf6   :  { %1179 = vmatprep.mubr.msk.bf16.mxu1 %vm278_vm3, %v237_v20 }
  0xfd   :  { %1180 = vmatmul.mubr.msk.bf16.gmra.mxu1 %vm278_vm3, %v238_v26  ;;  %v1281_v26 = vld [vmem:[#allocation2] sm:$0xff]  }
  0xfe   :  { %1213 = vmatprep.subr.bf16.mxu1 %v1281_v26 }
  0xff   :  { %1214 = vmatpush3.bf16.msra.mxu1 %v1281_v26  ;;  %v1288_v26 = vld [vmem:[%s1560_s9 + $0x8] sm:$0xff]  }
 0x1a5   :  { %v1169_v33 = vpop.f32.mrf.mxu1 }
 0x1a6   :  { %v346_v39 = vadd.f32 %v1169_v33, %v1032_v35 }
 0x1a7   :  { %v337_v34 = vpop.f32.mrf.mxu1 }
 0x1a8   :  { %v338_v37 = vadd.f32 %v1032_v35, %v337_v34  ;;  %v402_v46 = vmax.f32 %v346_v39, 0.0  ;;  %v1045_v34 = vld [vmem:[%s1557_s6] ss:$0 sm:$0xff] }
 0x1a9   :  { %v1170_v36 = vpop.f32.mrf.mxu1 }
 0x1aa   :  { %v349_v38 = vadd.f32 %v1170_v36, %v1032_v35  ;;  %v400_v44 = vmax.f32 %v338_v37, 0.0 }
 0x1ab   :  { %v340_v40 = vpop.f32.mrf.mxu1 }
 0x1ac   :  { %v341_v41 = vadd.f32 %v1032_v35, %v340_v40  ;;  %v403_v42 = vmax.f32 %v349_v38, 0.0 }
 0x1ad   :  { %v1173_v43 = vpop.f32.mrf.mxu1 }
 0x1ae   :  { %v401_v45 = vmax.f32 %v341_v41, 0.0  ;;  %v417_v49 = vpack.c.bf16 %v403_v42, %v402_v46  ;;  %v362_v53 = vadd.f32 %v1173_v43, %v1032_v35 }
 0x1af   :  { %v353_v47 = vpop.f32.mrf.mxu1 }
 0x1b0   :  { %v416_v48 = vpack.c.bf16 %v401_v45, %v400_v44  ;;  %v354_v51 = vadd.f32 %v1032_v35, %v353_v47  ;;  %v406_v60 = vmax.f32 %v362_v53, 0.0 }
 0x1b1   :  { %v1174_v50 = vpop.f32.mrf.mxu1 }
 0x1b2   :  { %v365_v52 = vadd.f32 %v1174_v50, %v1032_v35  ;;  %1191 = vmatprep.mubr.msk.bf16.mxu0 %vm278_vm3, %v416_v48  ;;  %v404_v58 = vmax.f32 %v354_v51, 0.0 }
 0x1b3   :  { %v356_v54 = vpop.f32.mrf.mxu1  ;;  %1192 = vmatmul.mubr.msk.bf16.vlgmr.msra.gmra.mxu0 %vm278_vm3, %v417_v49 }
 0x1b4   :  { %v357_v55 = vadd.f32 %v1032_v35, %v356_v54  ;;  %v407_v56 = vmax.f32 %v365_v52, 0.0  ;;  %1232 = vmatpush3.bf16.msra.mxu0 %v1282_v27  ;;  %v1289_v27 = vld [vmem:[%s1560_s9] sm:$0xff]  }
 0x1b5   :  { %v1177_v57 = vpop.f32.mrf.mxu1  ;;  %1233 = vmatprep.subr.bf16.mxu0 %v1283_v28 }
 0x1b6   :  { %v405_v59 = vmax.f32 %v357_v55, 0.0  ;;  %v419_v63 = vpack.c.bf16 %v407_v56, %v406_v60  ;;  %v378_v3 = vadd.f32 %v1177_v57, %v1032_v35 }
 0x1b7   :  { %v369_v61 = vpop.f32.mrf.mxu1 }
 0x1b8   :  { %v418_v62 = vpack.c.bf16 %v405_v59, %v404_v58  ;;  %v370_v1 = vadd.f32 %v1032_v35, %v369_v61  ;;  %v410_v10 = vmax.f32 %v378_v3, 0.0  ;;  %1234 = vmatpush3.bf16.msra.mxu0 %v1283_v28 }
 0x1b9   :  { %v1178_v0 = vpop.f32.mrf.mxu1  ;;  %1235 = vmatprep.subr.bf16.mxu0 %v1284_v29 }
 0x1ba   :  { %v381_v2 = vadd.f32 %v1178_v0, %v1032_v35  ;;  %1195 = vmatprep.mubr.msk.bf16.mxu0 %vm278_vm3, %v418_v62  ;;  %v408_v8 = vmax.f32 %v370_v1, 0.0 }
 0x1bb   :  { %v372_v4 = vpop.f32.mrf.mxu1  ;;  %1196 = vmatmul.mubr.msk.bf16.gmra.mxu0 %vm278_vm3, %v419_v63 }
 0x1bc   :  { %v373_v5 = vadd.f32 %v1032_v35, %v372_v4  ;;  %v411_v6 = vmax.f32 %v381_v2, 0.0  ;;  %1236 = vmatpush3.bf16.msra.mxu0 %v1284_v29 }
 0x1bd   :  { %v1181_v7 = vpop.f32.mrf.mxu1  ;;  %1237 = vmatprep.subr.bf16.mxu0 %v1285_v30 }
 0x1be   :  { %v409_v9 = vmax.f32 %v373_v5, 0.0  ;;  %v421_v13 = vpack.c.bf16 %v411_v6, %v410_v10  ;;  %v394_v17 = vadd.f32 %v1181_v7, %v1032_v35 }
 0x1bf   :  { %v385_v11 = vpop.f32.mrf.mxu1 }
 0x1c0   :  { %v420_v12 = vpack.c.bf16 %v409_v9, %v408_v8  ;;  %v386_v15 = vadd.f32 %v1032_v35, %v385_v11  ;;  %v414_v23 = vmax.f32 %v394_v17, 0.0  ;;  %1238 = vmatpush3.bf16.msra.mxu0 %v1285_v30  ;;  %v1058_v30 = vld [vmem:[%s1559_s8] ss:$0 sm:$0xff] }
 0x1c1   :  { %v1182_v14 = vpop.f32.mrf.mxu1  ;;  %1239 = vmatprep.subr.bf16.mxu0 %v1286_v31 }
 0x1c2   :  { %v397_v16 = vadd.f32 %v1182_v14, %v1032_v35  ;;  %1199 = vmatprep.mubr.msk.bf16.mxu0 %vm278_vm3, %v420_v12  ;;  %v412_v21 = vmax.f32 %v386_v15, 0.0 }
 0x1c3   :  { %v388_v18 = vpop.f32.mrf.mxu1  ;;  %1200 = vmatmul.mubr.msk.bf16.gmra.mxu0 %vm278_vm3, %v421_v13 }
 0x1c4   :  { %v389_v19 = vadd.f32 %v1032_v35, %v388_v18  ;;  %v415_v20 = vmax.f32 %v397_v16, 0.0  ;;  %1240 = vmatpush3.bf16.msra.mxu0 %v1286_v31 }
 0x1c6   :  { %v413_v22 = vmax.f32 %v389_v19, 0.0  ;;  %v423_v25 = vpack.c.bf16 %v415_v20, %v414_v23 }
 0x1c8   :  { %v422_v24 = vpack.c.bf16 %v413_v22, %v412_v21 }
 0x1ca   :  { %1203 = vmatprep.mubr.msk.bf16.mxu0 %vm278_vm3, %v422_v24 }
 0x1cb   :  { %1204 = vmatmul.mubr.msk.bf16.gmra.mxu0 %vm278_vm3, %v423_v25  ;;  %v1287_v25 = vld [vmem:[%s1560_s9 + $0x10] sm:$0xff]  }
 0x1cc   :  { %1241 = vmatprep.subr.bf16.mxu0 %v1287_v25 }
 0x1cd   :  { %1242 = vmatpush3.bf16.msra.mxu0 %v1287_v25  ;;  %v1071_v25 = vld [vmem:[%s1561_s10] ss:$0 sm:$0xff]  ;;  %s1338_s10 = smov [#allocation5]  }
 0x1ce   :  { %1243 = vmatprep.subr.bf16.mxu0 %v1288_v26  ;;  %s1014_s3 = sshll.u32 %s1338_s10, 4  ;;  %s1015_s3 = int_to_ptr.vmem [resolvable:$true] %s1014_s3 }
 0x1cf   :  { %s1310_s27 = scalar_lea.vmem %s1015_s3, 32  ;;  %p1315_p6 = scmp.lt.s32.totalorder %s1015_s3, %s1015_s3 }
 0x1d0   :  { %p1311_p5 = scmp.ne.s32.totalorder %s1015_s3, %s1310_s27  ;;  %p1316_p7 = scmp.lt.s32.totalorder %s1310_s27, %s1310_s27 }
 0x1d1   :  { %1244 = vmatpush3.bf16.msra.mxu0 %v1288_v26 }
 0x1d2   :  { %1245 = vmatprep.subr.bf16.mxu0 %v1289_v27  ;;  %p1317_p8 = por %p1316_p7, %p1315_p6 }
 0x1d4   :  { %p1318_p9 = pnand %p1317_p8, %p1311_p5 }
 0x1d5   :  { %1246 = vmatpush3.bf16.msra.mxu0 %v1289_v27 }
 0x273   :  { %v1193_v32 = vpop.f32.mrf.mxu0 }
 0x274   :  { %v530_v38 = vadd.f32 %v1193_v32, %v1045_v34 }
 0x275   :  { %v521_v33 = vpop.f32.mrf.mxu0 }
 0x276   :  { %v522_v36 = vadd.f32 %v1045_v34, %v521_v33  ;;  %v586_v45 = vmax.f32 %v530_v38, 0.0 }
 0x277   :  { %v1194_v35 = vpop.f32.mrf.mxu0 }
 0x278   :  { %v533_v37 = vadd.f32 %v1194_v35, %v1045_v34  ;;  %v584_v43 = vmax.f32 %v522_v36, 0.0 }
 0x279   :  { %v524_v39 = vpop.f32.mrf.mxu0 }
 0x27a   :  { %v525_v40 = vadd.f32 %v1045_v34, %v524_v39  ;;  %v587_v41 = vmax.f32 %v533_v37, 0.0 }
 0x27b   :  { %v1197_v42 = vpop.f32.mrf.mxu0 }
 0x27c   :  { %v585_v44 = vmax.f32 %v525_v40, 0.0  ;;  %v601_v48 = vpack.c.bf16 %v587_v41, %v586_v45  ;;  %v546_v52 = vadd.f32 %v1197_v42, %v1045_v34 }
 0x27d   :  { %v537_v46 = vpop.f32.mrf.mxu0 }
 0x27e   :  { %v600_v47 = vpack.c.bf16 %v585_v44, %v584_v43  ;;  %v538_v50 = vadd.f32 %v1045_v34, %v537_v46  ;;  %v590_v59 = vmax.f32 %v546_v52, 0.0 }
 0x27f   :  { %v1198_v49 = vpop.f32.mrf.mxu0 }
 0x280   :  { %v549_v51 = vadd.f32 %v1198_v49, %v1045_v34  ;;  %1215 = vmatprep.mubr.msk.bf16.mxu1 %vm278_vm3, %v600_v47  ;;  %v588_v57 = vmax.f32 %v538_v50, 0.0 }
 0x281   :  { %v540_v53 = vpop.f32.mrf.mxu0  ;;  %1216 = vmatmul.mubr.msk.bf16.vlgmr.msra.gmra.mxu1 %vm278_vm3, %v601_v48 }
 0x282   :  { %v541_v54 = vadd.f32 %v1045_v34, %v540_v53  ;;  %v591_v55 = vmax.f32 %v549_v51, 0.0 }
 0x283   :  { %v1201_v56 = vpop.f32.mrf.mxu0 }
 0x284   :  { %v589_v58 = vmax.f32 %v541_v54, 0.0  ;;  %v603_v62 = vpack.c.bf16 %v591_v55, %v590_v59  ;;  %v562_v2 = vadd.f32 %v1201_v56, %v1045_v34 }
 0x285   :  { %v553_v60 = vpop.f32.mrf.mxu0 }
 0x286   :  { %v602_v61 = vpack.c.bf16 %v589_v58, %v588_v57  ;;  %v554_v0 = vadd.f32 %v1045_v34, %v553_v60  ;;  %v594_v9 = vmax.f32 %v562_v2, 0.0 }
 0x287   :  { %v1202_v63 = vpop.f32.mrf.mxu0 }
 0x288   :  { %v565_v1 = vadd.f32 %v1202_v63, %v1045_v34  ;;  %1219 = vmatprep.mubr.msk.bf16.mxu1 %vm278_vm3, %v602_v61  ;;  %v592_v7 = vmax.f32 %v554_v0, 0.0 }
 0x289   :  { %v556_v3 = vpop.f32.mrf.mxu0  ;;  %1220 = vmatmul.mubr.msk.bf16.gmra.mxu1 %vm278_vm3, %v603_v62 }
 0x28a   :  { %v557_v4 = vadd.f32 %v1045_v34, %v556_v3  ;;  %v595_v5 = vmax.f32 %v565_v1, 0.0 }
 0x28b   :  { %v1205_v6 = vpop.f32.mrf.mxu0 }
 0x28c   :  { %v593_v8 = vmax.f32 %v557_v4, 0.0  ;;  %v605_v12 = vpack.c.bf16 %v595_v5, %v594_v9  ;;  %v578_v16 = vadd.f32 %v1205_v6, %v1045_v34 }
 0x28d   :  { %v569_v10 = vpop.f32.mrf.mxu0 }
 0x28e   :  { %v604_v11 = vpack.c.bf16 %v593_v8, %v592_v7  ;;  %v570_v14 = vadd.f32 %v1045_v34, %v569_v10  ;;  %v598_v22 = vmax.f32 %v578_v16, 0.0 }
 0x28f   :  { %v1206_v13 = vpop.f32.mrf.mxu0 }
 0x290   :  { %v581_v15 = vadd.f32 %v1206_v13, %v1045_v34  ;;  %1223 = vmatprep.mubr.msk.bf16.mxu1 %vm278_vm3, %v604_v11  ;;  %v596_v20 = vmax.f32 %v570_v14, 0.0 }
 0x291   :  { %v572_v17 = vpop.f32.mrf.mxu0  ;;  %1224 = vmatmul.mubr.msk.bf16.gmra.mxu1 %vm278_vm3, %v605_v12 }
 0x292   :  { %v573_v18 = vadd.f32 %v1045_v34, %v572_v17  ;;  %v599_v19 = vmax.f32 %v581_v15, 0.0 }
 0x294   :  { %v597_v21 = vmax.f32 %v573_v18, 0.0  ;;  %v607_v24 = vpack.c.bf16 %v599_v19, %v598_v22 }
 0x296   :  { %v606_v23 = vpack.c.bf16 %v597_v21, %v596_v20 }
 0x298   :  { %1227 = vmatprep.mubr.msk.bf16.mxu1 %vm278_vm3, %v606_v23 }
 0x299   :  { %1228 = vmatmul.mubr.msk.bf16.gmra.mxu1 %vm278_vm3, %v607_v24 }
 0x341   :  { %v1217_v28 = vpop.f32.mrf.mxu1 }
 0x342   :  { %v714_v34 = vadd.f32 %v1217_v28, %v1058_v30 }
 0x343   :  { %v705_v29 = vpop.f32.mrf.mxu1 }
 0x344   :  { %v706_v32 = vadd.f32 %v1058_v30, %v705_v29  ;;  %v770_v41 = vmax.f32 %v714_v34, 0.0 }
 0x345   :  { %v1218_v31 = vpop.f32.mrf.mxu1 }
 0x346   :  { %v717_v33 = vadd.f32 %v1218_v31, %v1058_v30  ;;  %v768_v39 = vmax.f32 %v706_v32, 0.0 }
 0x347   :  { %v708_v35 = vpop.f32.mrf.mxu1 }
 0x348   :  { %v709_v36 = vadd.f32 %v1058_v30, %v708_v35  ;;  %v771_v37 = vmax.f32 %v717_v33, 0.0 }
 0x349   :  { %v1221_v38 = vpop.f32.mrf.mxu1 }
 0x34a   :  { %v769_v40 = vmax.f32 %v709_v36, 0.0  ;;  %v785_v44 = vpack.c.bf16 %v771_v37, %v770_v41  ;;  %v730_v48 = vadd.f32 %v1221_v38, %v1058_v30 }
 0x34b   :  { %v721_v42 = vpop.f32.mrf.mxu1 }
 0x34c   :  { %v784_v43 = vpack.c.bf16 %v769_v40, %v768_v39  ;;  %v722_v46 = vadd.f32 %v1058_v30, %v721_v42  ;;  %v774_v55 = vmax.f32 %v730_v48, 0.0 }
 0x34d   :  { %v1222_v45 = vpop.f32.mrf.mxu1 }
 0x34e   :  { %v733_v47 = vadd.f32 %v1222_v45, %v1058_v30  ;;  %1247 = vmatprep.mubr.bf16.mxu0 %v784_v43  ;;  %v772_v53 = vmax.f32 %v722_v46, 0.0 }
 0x34f   :  { %v724_v49 = vpop.f32.mrf.mxu1  ;;  %1248 = vmatmul.mubr.bf16.vlgmr.msra.gmra.mxu0 %v785_v44 }
 0x350   :  { %v725_v50 = vadd.f32 %v1058_v30, %v724_v49  ;;  %v775_v51 = vmax.f32 %v733_v47, 0.0 }
 0x351   :  { %v1225_v52 = vpop.f32.mrf.mxu1 }
 0x352   :  { %v773_v54 = vmax.f32 %v725_v50, 0.0  ;;  %v787_v58 = vpack.c.bf16 %v775_v51, %v774_v55  ;;  %v746_v62 = vadd.f32 %v1225_v52, %v1058_v30 }
 0x353   :  { %v737_v56 = vpop.f32.mrf.mxu1 }
 0x354   :  { %v786_v57 = vpack.c.bf16 %v773_v54, %v772_v53  ;;  %v738_v60 = vadd.f32 %v1058_v30, %v737_v56  ;;  %v778_v5 = vmax.f32 %v746_v62, 0.0 }
 0x355   :  { %v1226_v59 = vpop.f32.mrf.mxu1 }
 0x356   :  { %v749_v61 = vadd.f32 %v1226_v59, %v1058_v30  ;;  %1251 = vmatprep.mubr.bf16.mxu0 %v786_v57  ;;  %v776_v3 = vmax.f32 %v738_v60, 0.0 }
 0x357   :  { %v740_v63 = vpop.f32.mrf.mxu1  ;;  %1252 = vmatmul.mubr.bf16.gmra.mxu0 %v787_v58 }
 0x358   :  { %v741_v0 = vadd.f32 %v1058_v30, %v740_v63  ;;  %v779_v1 = vmax.f32 %v749_v61, 0.0 }
 0x359   :  { %v1229_v2 = vpop.f32.mrf.mxu1 }
 0x35a   :  { %v777_v4 = vmax.f32 %v741_v0, 0.0  ;;  %v789_v8 = vpack.c.bf16 %v779_v1, %v778_v5  ;;  %v762_v12 = vadd.f32 %v1229_v2, %v1058_v30 }
 0x35b   :  { %v753_v6 = vpop.f32.mrf.mxu1 }
 0x35c   :  { %v788_v7 = vpack.c.bf16 %v777_v4, %v776_v3  ;;  %v754_v10 = vadd.f32 %v1058_v30, %v753_v6  ;;  %v782_v18 = vmax.f32 %v762_v12, 0.0 }
 0x35d   :  { %v1230_v9 = vpop.f32.mrf.mxu1 }
 0x35e   :  { %v765_v11 = vadd.f32 %v1230_v9, %v1058_v30  ;;  %1255 = vmatprep.mubr.bf16.mxu0 %v788_v7  ;;  %v780_v16 = vmax.f32 %v754_v10, 0.0 }
 0x35f   :  { %v756_v13 = vpop.f32.mrf.mxu1  ;;  %1256 = vmatmul.mubr.bf16.gmra.mxu0 %v789_v8 }
 0x360   :  { %v757_v14 = vadd.f32 %v1058_v30, %v756_v13  ;;  %v783_v15 = vmax.f32 %v765_v11, 0.0 }
 0x362   :  { %v781_v17 = vmax.f32 %v757_v14, 0.0  ;;  %v791_v20 = vpack.c.bf16 %v783_v15, %v782_v18 }
 0x364   :  { %v790_v19 = vpack.c.bf16 %v781_v17, %v780_v16 }
 0x366   :  { %1259 = vmatprep.mubr.bf16.mxu0 %v790_v19 }
 0x367   :  { %1260 = vmatmul.mubr.bf16.gmra.mxu0 %v791_v20 }
 0x40f   :  { %v1249_v21 = vpop.f32.mrf.mxu0 }
 0x410   :  { %v906_v31 = vadd.f32 %v1249_v21, %v1071_v25 }
 0x411   :  { %v897_v22 = vpop.f32.mrf.mxu0 }
 0x412   :  { %v898_v29 = vadd.f32 %v1071_v25, %v897_v22  ;;  %v962_v39 = vmax.f32 %v906_v31, 0.0 }
 0x413   :  { %v1250_v23 = vpop.f32.mrf.mxu0 }
 0x414   :  { %v909_v30 = vadd.f32 %v1250_v23, %v1071_v25  ;;  %v960_v36 = vmax.f32 %v898_v29, 0.0 }
 0x415   :  { %v900_v24 = vpop.f32.mrf.mxu0 }
 0x416   :  { %v901_v27 = vadd.f32 %v1071_v25, %v900_v24  ;;  %v963_v37 = vmax.f32 %v909_v30, 0.0  ;;  %v976_v46 = vmax.f32 %v960_v36, %v962_v39 }
 0x417   :  { %v1253_v26 = vpop.f32.mrf.mxu0 }
 0x418   :  { %v961_v33 = vmax.f32 %v901_v27, 0.0  ;;  %v922_v47 = vadd.f32 %v1253_v26, %v1071_v25 }
 0x419   :  { %v913_v28 = vpop.f32.mrf.mxu0 }
 0x41a   :  { %v914_v34 = vadd.f32 %v1071_v25, %v913_v28  ;;  %v977_v41 = vmax.f32 %v961_v33, %v963_v37  ;;  %v966_v54 = vmax.f32 %v922_v47, 0.0 }
 0x41b   :  { %v1254_v32 = vpop.f32.mrf.mxu0 }
 0x41c   :  { %v964_v42 = vmax.f32 %v914_v34, 0.0  ;;  %v925_v43 = vadd.f32 %v1254_v32, %v1071_v25 }
 0x41d   :  { %v916_v35 = vpop.f32.mrf.mxu0 }
 0x41e   :  { %v917_v38 = vadd.f32 %v1071_v25, %v916_v35  ;;  %v978_v50 = vmax.f32 %v976_v46, %v964_v42  ;;  %v967_v51 = vmax.f32 %v925_v43, 0.0 }
 0x41f   :  { %v1257_v40 = vpop.f32.mrf.mxu0 }
 0x420   :  { %v965_v44 = vmax.f32 %v917_v38, 0.0  ;;  %v938_v56 = vadd.f32 %v1257_v40, %v1071_v25  ;;  %v980_v58 = vmax.f32 %v978_v50, %v966_v54 }
 0x421   :  { %v929_v45 = vpop.f32.mrf.mxu0 }
 0x422   :  { %v979_v48 = vmax.f32 %v977_v41, %v965_v44  ;;  %v930_v52 = vadd.f32 %v1071_v25, %v929_v45  ;;  %v970_v1 = vmax.f32 %v938_v56, 0.0 }
 0x423   :  { %v1258_v49 = vpop.f32.mrf.mxu0 }
 0x424   :  { %v981_v55 = vmax.f32 %v979_v48, %v967_v51  ;;  %v968_v60 = vmax.f32 %v930_v52, 0.0  ;;  %v941_v61 = vadd.f32 %v1258_v49, %v1071_v25 }
 0x425   :  { %v932_v53 = vpop.f32.mrf.mxu0 }
 0x426   :  { %v933_v59 = vadd.f32 %v1071_v25, %v932_v53  ;;  %v982_v63 = vmax.f32 %v980_v58, %v981_v55  ;;  %v989_v5 = vmax.f32 %v968_v60, %v970_v1  ;;  %v971_v6 = vmax.f32 %v941_v61, 0.0 }
 0x427   :  { %v1261_v57 = vpop.f32.mrf.mxu0 }
 0x428   :  { %v969_v3 = vmax.f32 %v933_v59, 0.0  ;;  %v983_v8 = vrot.slane %v982_v63, 4  ;;  %v954_v9 = vadd.f32 %v1261_v57, %v1071_v25 }
 0x429   :  { %v945_v62 = vpop.f32.mrf.mxu0 }
 0x42a   :  { %v946_v0 = vadd.f32 %v1071_v25, %v945_v62  ;;  %v990_v12 = vmax.f32 %v969_v3, %v971_v6  ;;  %v984_v15 = vmax.f32 %v982_v63, %v983_v8  ;;  %v974_v16 = vmax.f32 %v954_v9, 0.0 }
 0x42b   :  { %v1262_v2 = vpop.f32.mrf.mxu0 }
 0x42c   :  { %v972_v4 = vmax.f32 %v946_v0, 0.0  ;;  %v957_v10 = vadd.f32 %v1262_v2, %v1071_v25  ;;  %v985_v21 = vrot.slane %v984_v15, 2 }
 0x42d   :  { %v948_v7 = vpop.f32.mrf.mxu0 }
 0x42e   :  { %v949_v11 = vadd.f32 %v1071_v25, %v948_v7  ;;  %v991_v13 = vmax.f32 %v989_v5, %v972_v4  ;;  %v975_v17 = vmax.f32 %v957_v10, 0.0  ;;  %v986_v26 = vmax.f32 %v984_v15, %v985_v21 }
 0x430   :  { %v973_v14 = vmax.f32 %v949_v11, 0.0  ;;  %v993_v19 = vmax.f32 %v991_v13, %v974_v16  ;;  %v987_v28 = vrot.slane %v986_v26, 1 }
 0x432   :  { %v992_v18 = vmax.f32 %v990_v12, %v973_v14  ;;  %v988_v25 = vmax.f32 %v986_v26, %v987_v28 }
 0x434   :  { %v994_v20 = vmax.f32 %v992_v18, %v975_v17 }
 0x436   :  { %v995_v22 = vmax.f32 %v993_v19, %v994_v20 }
 0x438   :  { %v996_v23 = vrot.slane %v995_v22, 4 }
 0x43a   :  { %v997_v24 = vmax.f32 %v995_v22, %v996_v23 }
 0x43c   :  { %v998_v27 = vrot.slane %v997_v24, 2 }
 0x43e   :  { %v999_v29 = vmax.f32 %v997_v24, %v998_v27 }
 0x440   :  { %v1000_v30 = vrot.slane %v999_v29, 1 }
 0x442   :  { %v1001_v31 = vmax.f32 %v999_v29, %v1000_v30 }
 0x444   :  { %v1005_v32 = vsel %vm1004_vm4, %v1001_v31, %v988_v25 }
 0x445   :  { %1007 = vst [vmem:[#allocation5] sm:$0x3] %v1005_v32 }
 0x446   :  { %1321 = shalt.err (!%p1318_p9)
}
 0x447   :  { %1017 = dma.vmem_to_hbm [thread:$0]  %s1015_s3, 32, %s1562_s11, [#allocation4]  }
 0x448   :  { %1332 = dma.done.wait [#allocation4], 32  }
 0x449   :  { %1333 = vsyncadd [#allocation4], 4294967264 }
 0x44a   :  { %1021 = vsyncpa [#allocation3], 1 }
 0x44b   :  { %1022 = vsyncpa [#allocation4], 1 }

</bundles_post_ra>
